<compile_context>
chip_gen: v7x
topology: tpu7x:2x2x1
jax: 0.10.0
libtpu: 0.0.40
codegen_flags: <defaults>
</compile_context>

<pallas_src>
import jax
import jax.numpy as jnp
from jax.experimental import pallas as pl
from jax.experimental.pallas import tpu as pltpu

LANE = 128


def _round_up(n, m):
    return ((n + m - 1) // m) * m


def mlp_kernel(x_ref, w1_ref, b1_ref, w2_ref, b2_ref, w3_ref, b3_ref, o_ref):
    # In-kernel f32 -> bf16 cast of the streamed x tile (keeps the HBM stream
    # as the caller's un-padded f32 array; the cast is nearly free on the VPU).
    x = x_ref[...].astype(jnp.bfloat16)

    # fc1 + relu : bf16 MXU operands, f32 accumulation, f32 epilogue.
    h1 = jnp.dot(x, w1_ref[...], preferred_element_type=jnp.float32)
    h1 = jnp.maximum(h1 + b1_ref[...], 0.0)

    # fc2 + relu : hidden dims padded to 128 lanes -> unmasked vregs, clean K.
    h2 = jnp.dot(h1.astype(jnp.bfloat16), w2_ref[...],
                 preferred_element_type=jnp.float32)
    h2 = jnp.maximum(h2 + b2_ref[...], 0.0)

    # fc3 (no activation), lane-dense padded logits.
    out = jnp.dot(h2.astype(jnp.bfloat16), w3_ref[...],
                  preferred_element_type=jnp.float32)
    o_ref[...] = (out + b3_ref[...]).astype(o_ref.dtype)


def mlp_forward(x, w1, b1, w2, b2, w3, b3, *, tm=None):
    B, in_features = x.shape
    h1_dim = w1.shape[1]
    h2_dim = w2.shape[1]
    num_classes = w3.shape[1]

    # Lane-pad the (tiny, VMEM-resident) parameter dims to 128.
    h1_pad = _round_up(h1_dim, LANE)       # 50  -> 128
    h2_pad = _round_up(h2_dim, LANE)       # 20  -> 128
    out_pad = _round_up(num_classes, LANE)  # 10  -> 128

    # Batch tile: large (HBM/overhead-bound), multiple of 16 (bf16 sublane
    # pack), and sized so large batches give >= 2 grid steps for v7x's two
    # TensorCores.  Non-divisible batches are handled by Pallas partial
    # blocks (masked tail writeback) — no wrapper-side padding of x.
    if tm is None:
        tm = min(1024, max(16, _round_up(pl.cdiv(B, 2), 16)))
    grid = (pl.cdiv(B, tm),)

    # Parameters: zero-pad + cast matmul operands to bf16 once in the wrapper
    # (a few hundred KiB total — negligible).  Biases stay f32 with zero
    # padding so ReLU of the padded lanes stays exactly zero.
    w1p = jnp.zeros((in_features, h1_pad), jnp.bfloat16)
    w1p = w1p.at[:, :h1_dim].set(w1.astype(jnp.bfloat16))
    b1p = jnp.zeros((1, h1_pad), jnp.float32)
    b1p = b1p.at[:, :h1_dim].set(b1.reshape(1, -1).astype(jnp.float32))

    w2p = jnp.zeros((h1_pad, h2_pad), jnp.bfloat16)
    w2p = w2p.at[:h1_dim, :h2_dim].set(w2.astype(jnp.bfloat16))
    b2p = jnp.zeros((1, h2_pad), jnp.float32)
    b2p = b2p.at[:, :h2_dim].set(b2.reshape(1, -1).astype(jnp.float32))

    w3p = jnp.zeros((h2_pad, out_pad), jnp.bfloat16)
    w3p = w3p.at[:h2_dim, :num_classes].set(w3.astype(jnp.bfloat16))
    b3p = jnp.zeros((1, out_pad), jnp.float32)
    b3p = b3p.at[:, :num_classes].set(b3.reshape(1, -1).astype(jnp.float32))

    # Constant index_map -> block index never changes -> these stay resident
    # in VMEM across grid steps (no per-step weight re-DMA).
    const = lambda arr: pl.BlockSpec(arr.shape, lambda i: (0, 0))

    out = pl.pallas_call(
        mlp_kernel,
        out_shape=jax.ShapeDtypeStruct((B, out_pad), jnp.float32),
        grid=grid,
        in_specs=[
            # Streamed x tiles: last dim == full array dim (784), so no 128
            # divisibility requirement; f32 straight from the caller.
            pl.BlockSpec((tm, in_features), lambda i: (i, 0)),
            const(w1p), const(b1p),
            const(w2p), const(b2p),
            const(w3p), const(b3p),
        ],
        out_specs=pl.BlockSpec((tm, out_pad), lambda i: (i, 0)),
        compiler_params=pltpu.CompilerParams(
            dimension_semantics=("parallel",)),   # v7x dual-TC batch split
    )(x, w1p, b1p, w2p, b2p, w3p, b3p)

    return out[:, :num_classes]


def init_linear_params(key, fan_in, fan_out):
    # Mimics PyTorch nn.Linear default init: U(-1/sqrt(fan_in), 1/sqrt(fan_in))
    kw, kb = jax.random.split(key)
    bound = 1.0 / jnp.sqrt(fan_in)
    # Stored as (in, out) so the kernel does x @ W
    w = jax.random.uniform(kw, (fan_in, fan_out), jnp.float32, -bound, bound)
    b = jax.random.uniform(kb, (1, fan_out), jnp.float32, -bound, bound)
    return w, b


if __name__ == "__main__":
    input_size = 784
    num_classes = 10
    batch = 8

    key = jax.random.PRNGKey(0)
    kx, k1, k2, k3 = jax.random.split(key, 4)

    x = jax.random.normal(kx, (batch, input_size), jnp.float32)
    w1, b1 = init_linear_params(k1, input_size, 50)
    w2, b2 = init_linear_params(k2, 50, 20)
    w3, b3 = init_linear_params(k3, 20, num_classes)

    out = jax.block_until_ready(mlp_forward(x, w1, b1, w2, b2, w3, b3))

    # Reference check (pure f32 JAX). The kernel uses bf16 MXU operands with
    # f32 accumulation, so tolerances are loosened vs. the all-f32 reference.
    ref = jnp.maximum(x @ w1 + b1, 0.0)
    ref = jnp.maximum(ref @ w2 + b2, 0.0)
    ref = ref @ w3 + b3
    assert out.shape == (batch, num_classes)
    assert jnp.allclose(out, ref, atol=5e-2, rtol=5e-2), float(
        jnp.max(jnp.abs(out - ref)))

    print("KERNEL_OK")
</pallas_src>

<mosaic_0001>
module attributes {stable_mosaic.version = 11 : i64} {
  func.func @mlp_kernel(%arg0: i32, %arg1: memref<16x784xf32, #tpu.memory_space<vmem>>, %arg2: memref<784x128xbf16, #tpu.memory_space<vmem>>, %arg3: memref<1x128xf32, #tpu.memory_space<vmem>>, %arg4: memref<128x128xbf16, #tpu.memory_space<vmem>>, %arg5: memref<1x128xf32, #tpu.memory_space<vmem>>, %arg6: memref<128x128xbf16, #tpu.memory_space<vmem>>, %arg7: memref<1x128xf32, #tpu.memory_space<vmem>>, %arg8: memref<16x128xf32, #tpu.memory_space<vmem>>) attributes {dimension_semantics = [#tpu.dimension_semantics<parallel>], iteration_bounds = array<i64: 1>, scalar_prefetch = 0 : i64, scratch_operands = 0 : i64, tpu.core_type = #tpu.core_type<tc>, window_params = [{transform_indices = @transform_0, window_bounds = array<i64: 16, 784>}, {pipeline_mode = #tpu.pipeline_mode<synchronous>, transform_indices = @transform_1, window_bounds = array<i64: 784, 128>}, {pipeline_mode = #tpu.pipeline_mode<synchronous>, transform_indices = @transform_2, window_bounds = array<i64: 1, 128>}, {pipeline_mode = #tpu.pipeline_mode<synchronous>, transform_indices = @transform_3, window_bounds = array<i64: 128, 128>}, {pipeline_mode = #tpu.pipeline_mode<synchronous>, transform_indices = @transform_4, window_bounds = array<i64: 1, 128>}, {pipeline_mode = #tpu.pipeline_mode<synchronous>, transform_indices = @transform_5, window_bounds = array<i64: 128, 128>}, {pipeline_mode = #tpu.pipeline_mode<synchronous>, transform_indices = @transform_6, window_bounds = array<i64: 1, 128>}, {transform_indices = @transform_7, window_bounds = array<i64: 16, 128>}]} {
    %c0 = arith.constant 0 : index
    %c0_0 = arith.constant 0 : index
    %0 = vector.load %arg1[%c0, %c0_0] : memref<16x784xf32, #tpu.memory_space<vmem>>, vector<16x784xf32>
    %1 = arith.truncf %0 : vector<16x784xf32> to vector<16x784xbf16>
    %c0_1 = arith.constant 0 : index
    %c0_2 = arith.constant 0 : index
    %2 = vector.load %arg2[%c0_1, %c0_2] : memref<784x128xbf16, #tpu.memory_space<vmem>>, vector<784x128xbf16>
    %cst = arith.constant dense<0.000000e+00> : vector<16x128xf32>
    %3 = tpu.matmul %1, %2, %cst {dimension_numbers = #tpu.dot_dimension_numbers<[1], [0], [0], [1], [0, 0, 1, 1], [], []>} : vector<16x784xbf16>, vector<784x128xbf16>, vector<16x128xf32> -> vector<16x128xf32>
    %c0_3 = arith.constant 0 : index
    %c0_4 = arith.constant 0 : index
    %4 = vector.load %arg3[%c0_3, %c0_4] : memref<1x128xf32, #tpu.memory_space<vmem>>, vector<1x128xf32>
    %5 = vector.broadcast %4 : vector<1x128xf32> to vector<16x128xf32>
    %6 = arith.addf %3, %5 : vector<16x128xf32>
    %cst_5 = arith.constant 0.000000e+00 : f32
    %7 = vector.broadcast %cst_5 : f32 to vector<16x128xf32>
    %8 = arith.maximumf %6, %7 : vector<16x128xf32>
    %9 = arith.truncf %8 : vector<16x128xf32> to vector<16x128xbf16>
    %c0_6 = arith.constant 0 : index
    %c0_7 = arith.constant 0 : index
    %10 = vector.load %arg4[%c0_6, %c0_7] : memref<128x128xbf16, #tpu.memory_space<vmem>>, vector<128x128xbf16>
    %cst_8 = arith.constant dense<0.000000e+00> : vector<16x128xf32>
    %11 = tpu.matmul %9, %10, %cst_8 {dimension_numbers = #tpu.dot_dimension_numbers<[1], [0], [0], [1], [0, 0, 1, 1], [], []>} : vector<16x128xbf16>, vector<128x128xbf16>, vector<16x128xf32> -> vector<16x128xf32>
    %c0_9 = arith.constant 0 : index
    %c0_10 = arith.constant 0 : index
    %12 = vector.load %arg5[%c0_9, %c0_10] : memref<1x128xf32, #tpu.memory_space<vmem>>, vector<1x128xf32>
    %13 = vector.broadcast %12 : vector<1x128xf32> to vector<16x128xf32>
    %14 = arith.addf %11, %13 : vector<16x128xf32>
    %cst_11 = arith.constant 0.000000e+00 : f32
    %15 = vector.broadcast %cst_11 : f32 to vector<16x128xf32>
    %16 = arith.maximumf %14, %15 : vector<16x128xf32>
    %17 = arith.truncf %16 : vector<16x128xf32> to vector<16x128xbf16>
    %c0_12 = arith.constant 0 : index
    %c0_13 = arith.constant 0 : index
    %18 = vector.load %arg6[%c0_12, %c0_13] : memref<128x128xbf16, #tpu.memory_space<vmem>>, vector<128x128xbf16>
    %cst_14 = arith.constant dense<0.000000e+00> : vector<16x128xf32>
    %19 = tpu.matmul %17, %18, %cst_14 {dimension_numbers = #tpu.dot_dimension_numbers<[1], [0], [0], [1], [0, 0, 1, 1], [], []>} : vector<16x128xbf16>, vector<128x128xbf16>, vector<16x128xf32> -> vector<16x128xf32>
    %c0_15 = arith.constant 0 : index
    %c0_16 = arith.constant 0 : index
    %20 = vector.load %arg7[%c0_15, %c0_16] : memref<1x128xf32, #tpu.memory_space<vmem>>, vector<1x128xf32>
    %21 = vector.broadcast %20 : vector<1x128xf32> to vector<16x128xf32>
    %22 = arith.addf %19, %21 : vector<16x128xf32>
    %c0_17 = arith.constant 0 : index
    %c0_18 = arith.constant 0 : index
    %23 = vector.load %arg8[%c0_17, %c0_18] : memref<16x128xf32, #tpu.memory_space<vmem>>, vector<16x128xf32>
    tpu.vector_store %arg8[%c0_17, %c0_18], %22 {strides = array<i32>} : memref<16x128xf32, #tpu.memory_space<vmem>>, vector<16x128xf32>,
    return
  }
  func.func @transform_0(%arg0: i32) -> (i32, i32) {
    %c0_i32 = arith.constant 0 : i32
    %c0_i32_0 = arith.constant 0 : i32
    return %arg0, %c0_i32 : i32, i32
  }
  func.func @transform_1(%arg0: i32) -> (i32, i32) {
    %c0_i32 = arith.constant 0 : i32
    %c0_i32_0 = arith.constant 0 : i32
    %c0_i32_1 = arith.constant 0 : i32
    return %c0_i32, %c0_i32_0 : i32, i32
  }
  func.func @transform_2(%arg0: i32) -> (i32, i32) {
    %c0_i32 = arith.constant 0 : i32
    %c0_i32_0 = arith.constant 0 : i32
    %c0_i32_1 = arith.constant 0 : i32
    return %c0_i32, %c0_i32_0 : i32, i32
  }
  func.func @transform_3(%arg0: i32) -> (i32, i32) {
    %c0_i32 = arith.constant 0 : i32
    %c0_i32_0 = arith.constant 0 : i32
    %c0_i32_1 = arith.constant 0 : i32
    return %c0_i32, %c0_i32_0 : i32, i32
  }
  func.func @transform_4(%arg0: i32) -> (i32, i32) {
    %c0_i32 = arith.constant 0 : i32
    %c0_i32_0 = arith.constant 0 : i32
    %c0_i32_1 = arith.constant 0 : i32
    return %c0_i32, %c0_i32_0 : i32, i32
  }
  func.func @transform_5(%arg0: i32) -> (i32, i32) {
    %c0_i32 = arith.constant 0 : i32
    %c0_i32_0 = arith.constant 0 : i32
    %c0_i32_1 = arith.constant 0 : i32
    return %c0_i32, %c0_i32_0 : i32, i32
  }
  func.func @transform_6(%arg0: i32) -> (i32, i32) {
    %c0_i32 = arith.constant 0 : i32
    %c0_i32_0 = arith.constant 0 : i32
    %c0_i32_1 = arith.constant 0 : i32
    return %c0_i32, %c0_i32_0 : i32, i32
  }
  func.func @transform_7(%arg0: i32) -> (i32, i32) {
    %c0_i32 = arith.constant 0 : i32
    %c0_i32_0 = arith.constant 0 : i32
    return %arg0, %c0_i32 : i32, i32
  }
}

</mosaic_0001>

<bundles_post_ra>
// kernel: tpu_custom_call.1
= control target key start
LH: loop header
LB: loop body
LE: loop exit
PB: predicated region body
PF: predicated region fallthrough
CT: control target
= control target key end

     0   :  { %12 = vsyncpa [#allocation3], 0  ;;  %s1480_s0 = inlined_call_operand.hbm [shape: f32[8,784], index: 0, kind: input, shape index: {}]   ;;  %s1481_s1 = inlined_call_operand.hbm [shape: bf16[784,128], index: 1, kind: input, shape index: {}]   ;;  %s1482_s2 = inlined_call_operand.vmem [shape: f32[1,128], index: 2, kind: input, shape index: {}]   ;;  %s1483_s3 = inlined_call_operand.hbm [shape: bf16[128,128], index: 3, kind: input, shape index: {}]   ;;  %s1484_s4 = inlined_call_operand.vmem [shape: f32[1,128], index: 4, kind: input, shape index: {}]   ;;  %s1485_s5 = inlined_call_operand.hbm [shape: bf16[128,128], index: 5, kind: input, shape index: {}]   ;;  %s1486_s6 = inlined_call_operand.vmem [shape: f32[1,128], index: 6, kind: input, shape index: {}]   ;;  %s1487_s7 = inlined_call_operand.hbm [shape: f32[8,128], index: 7, kind: output, shape index: {}]  }
   0x1   :  { %13 = vsyncpa [#allocation6], 0 }
   0x2   :  { %14 = vsyncpa [#allocation9], 0 }
   0x3   :  { %15 = vsyncpa [#allocation4], 0 }
   0x4   :  { %20 = vsyncadd [#allocation3], 896  ;;  %s1319_s24 = smov [#allocation5]   ;;  %s1201_s28 = scalar_lea.hbm %s1481_s1, 6272 }
   0x5   :  { %s33_s25 = sshll.u32 %s1319_s24, 4  ;;  %p1202_p0 = scmp.ne.s32.totalorder %s1481_s1, %s1201_s28  ;;  %s34_s25 = int_to_ptr.vmem [resolvable:$true] %s33_s25 }
   0x6   :  { %p1205_p1 = scmp.lt.u32.totalorder %s1201_s28, %s1481_s1 }
   0x8   :  { %p1207_p2 = pnand %p1205_p1, %p1202_p0 }
   0xa   :  { %1210 = shalt.err (!%p1207_p2)
}
   0xb   :  { %s1211_s10 = scalar_lea.vmem %s34_s25, 6272  ;;  %p1216_p4 = scmp.lt.s32.totalorder %s34_s25, %s34_s25 }
   0xc   :  { %p1212_p3 = scmp.ne.s32.totalorder %s34_s25, %s1211_s10  ;;  %p1217_p5 = scmp.lt.s32.totalorder %s1211_s10, %s1211_s10 }
   0xe   :  { %p1218_p6 = por %p1217_p5, %p1216_p4 }
  0x10   :  { %p1219_p7 = pnand %p1218_p6, %p1212_p3 }
  0x12   :  { %1222 = shalt.err (!%p1219_p7)
}
  0x13   :  { %s1320_s11 = smov 64   ;;  %s1321_s12 = smov 4  }
  0x14   :  { %39 = dma.hbm_to_vmem [thread:$0]  %s1481_s1, 6272, %s34_s25, [#allocation6], %s1320_s11, %s1320_s11, %s1321_s12  }
  0x15   :  { %s1322_s15 = smov [#allocation2]   ;;  %s1223_s19 = scalar_lea.hbm %s1480_s0, 896 }
  0x16   :  { %s21_s16 = sshll.u32 %s1322_s15, 4  ;;  %p1224_p8 = scmp.ne.s32.totalorder %s1480_s0, %s1223_s19  ;;  %s22_s16 = int_to_ptr.vmem [resolvable:$true] %s21_s16 }
  0x17   :  { %p1227_p9 = scmp.lt.u32.totalorder %s1223_s19, %s1480_s0 }
  0x19   :  { %p1229_p10 = pnand %p1227_p9, %p1224_p8 }
  0x1b   :  { %1232 = shalt.err (!%p1229_p10)
}
  0x1c   :  { %s1233_s24 = scalar_lea.vmem %s22_s16, 896  ;;  %s1237_s1 = scalar_lea.vmem %s22_s16, 1792 }
  0x1d   :  { %p1234_p11 = scmp.ne.s32.totalorder %s22_s16, %s1233_s24  ;;  %p1238_p12 = scmp.lt.s32.totalorder %s22_s16, %s22_s16 }
  0x1e   :  { %p1239_p13 = scmp.lt.s32.totalorder %s1237_s1, %s1233_s24 }
  0x20   :  { %p1240_p0 = por %p1239_p13, %p1238_p12 }
  0x22   :  { %p1241_p1 = pnand %p1240_p0, %p1234_p11 }
  0x24   :  { %1244 = shalt.err (!%p1241_p1)
}
  0x25   :  { %s1323_s25 = smov 896   ;;  %s1324_s26 = smov 56  }
  0x26   :  { %27 = dma.hbm_to_vmem [thread:$0]  %s1480_s0, 896, %s22_s16, [#allocation3], %s1323_s25, %s1323_s25, %s1324_s26  }
  0x27   :  { %s1325_s29 = smov [#allocation7]   ;;  %s1326_s8 = smov [#allocation8]  }
  0x28   :  { %s47_s30 = sshll.u32 %s1325_s29, 4  ;;  %s61_s9 = sshll.u32 %s1326_s8, 4  ;;  %s48_s30 = int_to_ptr.vmem [resolvable:$true] %s47_s30  ;;  %s1399_s9 = int_to_ptr.vmem [resolvable:$true] %s61_s9 }
  0x29   :  { %s1245_s14 = scalar_lea.hbm %s1483_s3, 1024 }
  0x2a   :  { %p1246_p2 = scmp.ne.s32.totalorder %s1483_s3, %s1245_s14  ;;  %p1249_p3 = scmp.lt.u32.totalorder %s1245_s14, %s1483_s3 }
  0x2c   :  { %p1251_p4 = pnand %p1249_p3, %p1246_p2 }
  0x2e   :  { %1254 = shalt.err (!%p1251_p4)
}
  0x2f   :  { %s1255_s0 = scalar_lea.vmem %s48_s30, 1024  ;;  %p1260_p6 = scmp.lt.s32.totalorder %s48_s30, %s48_s30 }
  0x30   :  { %p1256_p5 = scmp.ne.s32.totalorder %s48_s30, %s1255_s0  ;;  %p1261_p7 = scmp.lt.s32.totalorder %s1255_s0, %s1255_s0 }
  0x32   :  { %p1262_p8 = por %p1261_p7, %p1260_p6 }
  0x34   :  { %p1263_p9 = pnand %p1262_p8, %p1256_p5 }
  0x36   :  { %1266 = shalt.err (!%p1263_p9)
}
  0x37   :  { %53 = dma.hbm_to_vmem [thread:$0]  %s1483_s3, 1024, %s48_s30, [#allocation6], %s1320_s11, %s1320_s11, %s1321_s12  }
  0x38   :  { %s1267_s23 = scalar_lea.hbm %s1485_s5, 1024 }
  0x39   :  { %p1268_p10 = scmp.ne.s32.totalorder %s1485_s5, %s1267_s23  ;;  %p1271_p11 = scmp.lt.u32.totalorder %s1267_s23, %s1485_s5 }
  0x3b   :  { %p1273_p12 = pnand %p1271_p11, %p1268_p10 }
  0x3d   :  { %1276 = shalt.err (!%p1273_p12)
}
  0x3e   :  { %s1277_s27 = scalar_lea.vmem %s1399_s9, 1024  ;;  %p1282_p0 = scmp.lt.s32.totalorder %s1399_s9, %s1399_s9 }
  0x3f   :  { %p1278_p13 = scmp.ne.s32.totalorder %s1399_s9, %s1277_s27  ;;  %p1283_p1 = scmp.lt.s32.totalorder %s1277_s27, %s1277_s27 }
  0x41   :  { %p1284_p2 = por %p1283_p1, %p1282_p0 }
  0x43   :  { %p1285_p3 = pnand %p1284_p2, %p1278_p13 }
  0x45   :  { %1288 = shalt.err (!%p1285_p3)
}
  0x46   :  { %67 = dma.hbm_to_vmem [thread:$0]  %s1485_s5, 1024, %s1399_s9, [#allocation9], %s1320_s11, %s1320_s11, %s1321_s12  }
  0x47   :  { %1311 = dma.done.wait [#allocation3], 1792  }
  0x48   :  { %1312 = vsyncadd [#allocation3], 4294965504 }
  0x49   :  { %1313 = dma.done.wait [#allocation6], 7296  }
  0x4a   :  { %1314 = vsyncadd [#allocation6], 4294960000 }
  0x4b   :  { %1315 = dma.done.wait [#allocation9], 1024  }
  0x4c   :  { %1316 = vsyncadd [#allocation9], 4294966272  ;;  %v1136_v0 = vld [vmem:[#allocation5 + $0x40] sm:$0xff]   ;;  %v1140_v4 = vld [vmem:[#allocation5 + $0x48] sm:$0xff]   ;;  %v1327_v43 = vmov 0.0   ;;  %vm1328_vm0 = vmmov 0  }
  0x4d   :  { %v1137_v1 = vld [vmem:[#allocation5] sm:$0xff]   ;;  %991 = vmatprep.subr.bf16.mxu0 %v1136_v0  ;;  %v1141_v5 = vld [vmem:[#allocation5 + $0x8] sm:$0xff]   ;;  %v1144_v8 = vld [vmem:[#allocation5 + $0x50] sm:$0xff]   ;;  %vm503_vm1 = vcmask 130048  }
  0x4e   :  { %v1138_v2 = vld [vmem:[#allocation5 + $0xc0] sm:$0xff]   ;;  %992 = vmatpush3.bf16.msra.mxu0 %v1137_v1  ;;  %v1142_v6 = vld [vmem:[#allocation5 + $0xc8] sm:$0xff]   ;;  %v1145_v9 = vld [vmem:[#allocation5 + $0x10] sm:$0xff]  }
  0x4f   :  { %v1139_v3 = vld [vmem:[#allocation5 + $0x80] sm:$0xff]   ;;  %1013 = vmatprep.subr.bf16.mxu1 %v1138_v2  ;;  %993 = vmatprep.subr.bf16.mxu0 %v1140_v4  ;;  %v1143_v7 = vld [vmem:[#allocation5 + $0x88] sm:$0xff]   ;;  %v1146_v10 = vld [vmem:[#allocation5 + $0xd0] sm:$0xff]  }
  0x50   :  { %1014 = vmatpush3.bf16.msra.mxu1 %v1139_v3  ;;  %v1147_v11 = vld [vmem:[#allocation5 + $0x90] sm:$0xff]   ;;  %v1148_v12 = vld [vmem:[#allocation5 + $0x58] sm:$0xff]   ;;  %v1152_v16 = vld [vmem:[#allocation5 + $0x60] sm:$0xff]  }
  0x51   :  { %1015 = vmatprep.subr.bf16.mxu1 %v1142_v6  ;;  %v1149_v13 = vld [vmem:[#allocation5 + $0x18] sm:$0xff]   ;;  %v1153_v17 = vld [vmem:[#allocation5 + $0x20] sm:$0xff]   ;;  %v1156_v20 = vld [vmem:[#allocation5 + $0x68] sm:$0xff]  }
  0x52   :  { %994 = vmatpush3.bf16.msra.mxu0 %v1141_v5  ;;  %v1150_v14 = vld [vmem:[#allocation5 + $0xd8] sm:$0xff]   ;;  %v1154_v18 = vld [vmem:[#allocation5 + $0xe0] sm:$0xff]   ;;  %v1157_v21 = vld [vmem:[#allocation5 + $0x28] sm:$0xff]  }
  0x53   :  { %995 = vmatprep.subr.bf16.mxu0 %v1144_v8  ;;  %v1151_v15 = vld [vmem:[#allocation5 + $0x98] sm:$0xff]   ;;  %v1155_v19 = vld [vmem:[#allocation5 + $0xa0] sm:$0xff]   ;;  %v1158_v22 = vld [vmem:[#allocation5 + $0xe8] sm:$0xff]  }
  0x54   :  { %1016 = vmatpush3.bf16.msra.mxu1 %v1143_v7  ;;  %v1159_v23 = vld [vmem:[#allocation5 + $0xa8] sm:$0xff]   ;;  %v1160_v24 = vld [vmem:[#allocation5 + $0x70] sm:$0xff]   ;;  %v1164_v28 = vld [vmem:[#allocation5 + $0x78] sm:$0xff]  }
  0x55   :  { %1017 = vmatprep.subr.bf16.mxu1 %v1146_v10  ;;  %v1161_v25 = vld [vmem:[#allocation5 + $0x30] sm:$0xff]   ;;  %v1165_v29 = vld [vmem:[#allocation5 + $0x38] sm:$0xff]   ;;  %v90_v36 = vld [vmem:[#allocation2 + $0x38] sm:$0xff] }
  0x56   :  { %996 = vmatpush3.bf16.msra.mxu0 %v1145_v9  ;;  %v1162_v26 = vld [vmem:[#allocation5 + $0xf0] sm:$0xff]   ;;  %v1166_v30 = vld [vmem:[#allocation5 + $0xf8] sm:$0xff]   ;;  %v1168_v38 = vld [vmem:[#allocation5 + $0x140] sm:$0xff]  }
  0x57   :  { %997 = vmatprep.subr.bf16.mxu0 %v1148_v12  ;;  %v1163_v27 = vld [vmem:[#allocation5 + $0xb0] sm:$0xff]   ;;  %v84_v31 = vld [vmem:[#allocation2 + $0x8] sm:$0xff]  ;;  %v86_v39 = vld [vmem:[#allocation2 + $0x18] sm:$0xff] }
  0x58   :  { %1018 = vmatpush3.bf16.msra.mxu1 %v1147_v11  ;;  %v91_v32 = vld [vmem:[#allocation2 + $0x40] sm:$0xff]  ;;  %v1167_v34 = vld [vmem:[#allocation5 + $0xb8] sm:$0xff]   ;;  %v93_v40 = vld [vmem:[#allocation2 + $0x50] sm:$0xff] }
  0x59   :  { %1019 = vmatprep.subr.bf16.mxu1 %v1150_v14  ;;  %v98_v33 = vpack.c.bf16 %v91_v32, %v84_v31  ;;  %v83_v35 = vld [vmem:[#allocation2] sm:$0xff]  ;;  %v100_v41 = vpack.c.bf16 %v93_v40, %v86_v39  ;;  %v1169_v42 = vld [vmem:[#allocation5 + $0x100] sm:$0xff]   ;;  %v92_v45 = vld [vmem:[#allocation2 + $0x48] sm:$0xff] }
  0x5a   :  { %998 = vmatpush3.bf16.msra.mxu0 %v1149_v13  ;;  %v97_v37 = vpack.c.bf16 %v90_v36, %v83_v35  ;;  %v85_v44 = vld [vmem:[#allocation2 + $0x10] sm:$0xff]  ;;  %v1170_v47 = vld [vmem:[#allocation5 + $0x148] sm:$0xff]   ;;  %v1172_v49 = vld [vmem:[#allocation5 + $0x150] sm:$0xff]  }
  0x5b   :  { %999 = vmatprep.subr.bf16.mxu0 %v1152_v16  ;;  %539 = vmatprep.mubr.bf16.mxu0 %v98_v33  ;;  %v99_v46 = vpack.c.bf16 %v92_v45, %v85_v44  ;;  %v1171_v48 = vld [vmem:[#allocation5 + $0x108] sm:$0xff]   ;;  %v1173_v50 = vld [vmem:[#allocation5 + $0x110] sm:$0xff]   ;;  %v1174_v51 = vld [vmem:[#allocation5 + $0x158] sm:$0xff]  }
  0x5c   :  { %1020 = vmatpush3.bf16.msra.mxu1 %v1151_v15  ;;  %580 = vmatprep.mubr.bf16.mxu1 %v100_v41  ;;  %v1175_v52 = vld [vmem:[#allocation5 + $0x118] sm:$0xff]   ;;  %v1176_v53 = vld [vmem:[#allocation5 + $0x160] sm:$0xff]   ;;  %v1178_v55 = vld [vmem:[#allocation5 + $0x168] sm:$0xff]  }
  0x5d   :  { %1021 = vmatprep.subr.bf16.mxu1 %v1154_v18  ;;  %v1177_v54 = vld [vmem:[#allocation5 + $0x120] sm:$0xff]   ;;  %v88_v57 = vld [vmem:[#allocation2 + $0x28] sm:$0xff]  ;;  %v1179_v58 = vld [vmem:[#allocation5 + $0x128] sm:$0xff]  }
  0x5e   :  { %1000 = vmatpush3.bf16.msra.mxu0 %v1153_v17  ;;  %v1184_v56 = vld [vmem:[#allocation5 + $0x180] sm:$0xff]   ;;  %v1180_v59 = vld [vmem:[#allocation5 + $0x170] sm:$0xff]   ;;  %v96_v63 = vld [vmem:[#allocation2 + $0x68] sm:$0xff] }
  0x5f   :  { %1001 = vmatprep.subr.bf16.mxu0 %v1156_v20  ;;  %v95_v60 = vld [vmem:[#allocation2 + $0x60] sm:$0xff]  ;;  %v89_v62 = vld [vmem:[#allocation2 + $0x30] sm:$0xff]  ;;  %v1182_v2 = vld [vmem:[#allocation5 + $0x178] sm:$0xff]  }
  0x60   :  { %1022 = vmatpush3.bf16.msra.mxu1 %v1155_v19  ;;  %v102_v61 = vpack.c.bf16 %v95_v60, %v88_v57  ;;  %v103_v0 = vpack.c.bf16 %v96_v63, %v89_v62  ;;  %v1181_v1 = vld [vmem:[#allocation5 + $0x130] sm:$0xff]   ;;  %v1183_v3 = vld [vmem:[#allocation5 + $0x138] sm:$0xff]   ;;  %v94_v5 = vld [vmem:[#allocation2 + $0x58] sm:$0xff] }
  0x61   :  { %1023 = vmatprep.subr.bf16.mxu1 %v1158_v22  ;;  %v87_v4 = vld [vmem:[#allocation2 + $0x20] sm:$0xff]  ;;  %v1185_v7 = vld [vmem:[#allocation7] sm:$0xff]   ;;  %v1187_v9 = vld [vmem:[#allocation7 + $0x10] sm:$0xff]  }
  0x62   :  { %1002 = vmatpush3.bf16.msra.mxu0 %v1157_v21  ;;  %v101_v6 = vpack.c.bf16 %v94_v5, %v87_v4  ;;  %v1186_v8 = vld [vmem:[#allocation7 + $0x8] sm:$0xff]   ;;  %v1188_v10 = vld [vmem:[#allocation7 + $0x18] sm:$0xff]   ;;  %v1189_v11 = vld [vmem:[#allocation7 + $0x20] sm:$0xff]  }
  0x63   :  { %1003 = vmatprep.subr.bf16.mxu0 %v1160_v24  ;;  %v1190_v12 = vld [vmem:[#allocation7 + $0x28] sm:$0xff]   ;;  %v1191_v13 = vld [vmem:[#allocation7 + $0x30] sm:$0xff]   ;;  %v1192_v14 = vld [vmem:[#allocation7 + $0x38] sm:$0xff]  }
  0x64   :  { %1024 = vmatpush3.bf16.msra.mxu1 %v1159_v23  ;;  %v1193_v15 = vld [vmem:[#allocation8] sm:$0xff]   ;;  %v1194_v16 = vld [vmem:[#allocation8 + $0x8] sm:$0xff]   ;;  %v1195_v17 = vld [vmem:[#allocation8 + $0x10] sm:$0xff]  }
  0x65   :  { %1025 = vmatprep.subr.bf16.mxu1 %v1162_v26  ;;  %v1196_v18 = vld [vmem:[#allocation8 + $0x18] sm:$0xff]   ;;  %v1197_v19 = vld [vmem:[#allocation8 + $0x20] sm:$0xff]   ;;  %v1198_v20 = vld [vmem:[#allocation8 + $0x28] sm:$0xff]  }
  0x66   :  { %1004 = vmatpush3.bf16.msra.mxu0 %v1161_v25  ;;  %v922_v22 = vld [vmem:[%s1482_s2] ss:$0 sm:$0xff]  ;;  %v1200_v57 = vld [vmem:[#allocation8 + $0x38] sm:$0xff]  }
  0x67   :  { %1005 = vmatprep.subr.bf16.mxu0 %v1164_v28 }
  0x68   :  { %1026 = vmatpush3.bf16.msra.mxu1 %v1163_v27 }
  0x69   :  { %1027 = vmatprep.subr.bf16.mxu1 %v1166_v30 }
  0x6a   :  { %1006 = vmatpush3.bf16.msra.mxu0 %v1165_v29 }
  0x6b   :  { %1035 = vmatprep.subr.bf16.mxu0 %v1168_v38 }
  0x6c   :  { %1028 = vmatpush3.bf16.msra.mxu1 %v1167_v34 }
  0x6d   :  { %1077 = vmatprep.subr.bf16.mxu1 %v1327_v43  ;;  %540 = vmatmul.mubr.bf16.vlgmr.msra.gmra.mrb[0].mxu0 %v97_v37 }
  0x6e   :  { %1036 = vmatpush3.bf16.msra.mxu0 %v1169_v42  ;;  %621 = vmatprep.mubr.bf16.mxu0 %v102_v61 }
  0x6f   :  { %581 = vmatmul.mubr.bf16.vlgmr.msra.gmra.mrb[0].mxu1 %v99_v46  ;;  %1037 = vmatprep.subr.bf16.mxu0 %v1170_v47 }
  0x70   :  { %1079 = vmatprep.mubr.msk.bf16.mxu1 %vm1328_vm0, %v1327_v43  ;;  %1078 = vmatpush3.bf16.msra.mxu1 %v1184_v56  ;;  %v1199_v56 = vld [vmem:[#allocation8 + $0x30] sm:$0xff]  }
  0x71   :  { %1083 = vmatprep.subr.bf16.mxu1 %v1327_v43 }
  0x72   :  { %1038 = vmatpush3.bf16.msra.mxu0 %v1171_v48 }
  0x73   :  { %1039 = vmatprep.subr.bf16.mxu0 %v1172_v49 }
  0x76   :  { %1040 = vmatpush3.bf16.msra.mxu0 %v1173_v50 }
  0x77   :  { %1041 = vmatprep.subr.bf16.mxu0 %v1174_v51  ;;  %1080 = vmatmul.mubr.msk.bf16.vlgmr.msra.gmra.mrb[4].mxu1 %vm503_vm1, %v103_v0 }
  0x78   :  { %1099 = vmatprep.mubr.msk.bf16.mxu1 %vm1328_vm0, %v1327_v43  ;;  %1084 = vmatpush3.bf16.msra.mxu1 %v1185_v7 }
  0x79   :  { %1085 = vmatprep.subr.bf16.mxu1 %v1327_v43 }
  0x7a   :  { %1042 = vmatpush3.bf16.msra.mxu0 %v1175_v52 }
  0x7b   :  { %1043 = vmatprep.subr.bf16.mxu0 %v1176_v53 }
  0x7c   :  { %1086 = vmatpush3.bf16.msra.mxu1 %v1186_v8 }
  0x7d   :  { %1087 = vmatprep.subr.bf16.mxu1 %v1327_v43 }
  0x7e   :  { %1044 = vmatpush3.bf16.msra.mxu0 %v1177_v54 }
  0x7f   :  { %1045 = vmatprep.subr.bf16.mxu0 %v1178_v55 }
  0x80   :  { %1088 = vmatpush3.bf16.msra.mxu1 %v1187_v9 }
  0x81   :  { %1089 = vmatprep.subr.bf16.mxu1 %v1327_v43 }
  0x82   :  { %1046 = vmatpush3.bf16.msra.mxu0 %v1179_v58  ;;  %v973_v58 = vld [vmem:[%s1484_s4] ss:$0 sm:$0xff] }
  0x83   :  { %1047 = vmatprep.subr.bf16.mxu0 %v1180_v59 }
  0x84   :  { %1090 = vmatpush3.bf16.msra.mxu1 %v1188_v10 }
  0x85   :  { %1091 = vmatprep.subr.bf16.mxu1 %v1327_v43 }
  0x86   :  { %1048 = vmatpush3.bf16.msra.mxu0 %v1181_v1 }
  0x87   :  { %1049 = vmatprep.subr.bf16.mxu0 %v1182_v2 }
  0x88   :  { %1092 = vmatpush3.bf16.msra.mxu1 %v1189_v11 }
  0x89   :  { %1093 = vmatprep.subr.bf16.mxu1 %v1327_v43 }
  0x8a   :  { %1050 = vmatpush3.bf16.msra.mxu0 %v1183_v3 }
  0x8b   :  { %1103 = vmatprep.subr.bf16.mxu0 %v1327_v43 }
  0x8c   :  { %1094 = vmatpush3.bf16.msra.mxu1 %v1190_v12 }
  0x8d   :  { %622 = vmatmul.mubr.bf16.vlgmr.msra.gmra.mrb[4].mxu0 %v101_v6  ;;  %1095 = vmatprep.subr.bf16.mxu1 %v1327_v43 }
  0x8e   :  { %1119 = vmatprep.mubr.msk.bf16.mxu0 %vm1328_vm0, %v1327_v43  ;;  %1104 = vmatpush3.bf16.msra.mxu0 %v1193_v15 }
  0x8f   :  { %1105 = vmatprep.subr.bf16.mxu0 %v1327_v43 }
  0x90   :  { %1096 = vmatpush3.bf16.msra.mxu1 %v1191_v13 }
  0x91   :  { %1097 = vmatprep.subr.bf16.mxu1 %v1327_v43 }
  0x92   :  { %1106 = vmatpush3.bf16.msra.mxu0 %v1194_v16 }
  0x93   :  { %1107 = vmatprep.subr.bf16.mxu0 %v1327_v43 }
  0x94   :  { %1098 = vmatpush3.bf16.msra.mxu1 %v1192_v14 }
  0x96   :  { %1108 = vmatpush3.bf16.msra.mxu0 %v1195_v17 }
  0x97   :  { %1109 = vmatprep.subr.bf16.mxu0 %v1327_v43 }
  0x9a   :  { %1110 = vmatpush3.bf16.msra.mxu0 %v1196_v18 }
  0x9b   :  { %1111 = vmatprep.subr.bf16.mxu0 %v1327_v43 }
  0x9e   :  { %1112 = vmatpush3.bf16.msra.mxu0 %v1197_v19 }
  0x9f   :  { %1113 = vmatprep.subr.bf16.mxu0 %v1327_v43 }
  0xa2   :  { %1114 = vmatpush3.bf16.msra.mxu0 %v1198_v20 }
  0xa3   :  { %1115 = vmatprep.subr.bf16.mxu0 %v1327_v43 }
  0xa6   :  { %1116 = vmatpush3.bf16.msra.mxu0 %v1199_v56 }
  0xa7   :  { %1117 = vmatprep.subr.bf16.mxu0 %v1327_v43  ;;  %v982_v43 = vld [vmem:[%s1486_s6] ss:$0 sm:$0xff] }
  0xaa   :  { %1118 = vmatpush3.bf16.msra.mxu0 %v1200_v57 }
 0x140   :  { %v1007_v21 = vpop.f32.mrb[0].mxu0 }
 0x141   :  { %v1008_v23 = vpop.f32.mrb[1].mxu0 }
 0x142   :  { %v1009_v24 = vadd.f32 %v1008_v23, %v1007_v21  ;;  %v1010_v25 = vpop.f32.mrb[2].mxu0  ;;  %v1029_v26 = vpop.f32.mrb[0].mxu1 }
 0x143   :  { %v1011_v27 = vpop.f32.mrb[3].mxu0  ;;  %v1030_v30 = vpop.f32.mrb[1].mxu1 }
 0x144   :  { %v542_v28 = vadd.f32 %v1009_v24, %v922_v22  ;;  %v1012_v29 = vadd.f32 %v1011_v27, %v1010_v25  ;;  %v1031_v31 = vadd.f32 %v1030_v30, %v1029_v26  ;;  %v1032_v32 = vpop.f32.mrb[2].mxu1 }
 0x145   :  { %v1033_v34 = vpop.f32.mrb[3].mxu1 }
 0x146   :  { %v545_v33 = vadd.f32 %v1012_v29, %v922_v22  ;;  %v583_v35 = vadd.f32 %v1031_v31, %v542_v28  ;;  %v1034_v36 = vadd.f32 %v1033_v34, %v1032_v32 }
 0x148   :  { %v586_v37 = vadd.f32 %v1034_v36, %v545_v33 }
 0x14a   :  { %v664_v38 = vpop.f32.mrb[4].mxu1 }
 0x14b   :  { %v1081_v39 = vpop.f32.mrb[5].mxu1 }
 0x14c   :  { %v667_v40 = vpop.f32.mrb[6].mxu1 }
 0x14d   :  { %v1082_v41 = vpop.f32.mrb[7].mxu1 }
 0x160   :  { %v1051_v42 = vpop.f32.mrb[4].mxu0 }
 0x161   :  { %v1052_v44 = vpop.f32.mrb[5].mxu0 }
 0x162   :  { %v1053_v45 = vadd.f32 %v1052_v44, %v1051_v42  ;;  %v1054_v46 = vpop.f32.mrb[6].mxu0 }
 0x163   :  { %v1055_v47 = vpop.f32.mrb[7].mxu0 }
 0x164   :  { %v624_v48 = vadd.f32 %v1053_v45, %v583_v35  ;;  %v1056_v49 = vadd.f32 %v1055_v47, %v1054_v46 }
 0x166   :  { %v665_v50 = vadd.f32 %v664_v38, %v624_v48  ;;  %v627_v51 = vadd.f32 %v1056_v49, %v586_v37 }
 0x168   :  { %v668_v52 = vadd.f32 %v667_v40, %v627_v51  ;;  %v671_v53 = vmax.f32 %v665_v50, 0.0 }
 0x16a   :  { %v672_v54 = vmax.f32 %v668_v52, 0.0 }
 0x16c   :  { %v673_v55 = vpack.c.bf16 %v672_v54, %v671_v53 }
 0x16e   :  { %1100 = vmatmul.mubr.bf16.vlgmr.msra.gmra.mrb[8].mxu1 %v673_v55 }
 0x241   :  { %v779_v59 = vpop.f32.mrb[8].mxu1 }
 0x242   :  { %v780_v60 = vadd.f32 %v973_v58, %v779_v59  ;;  %v1101_v61 = vpop.f32.mrb[9].mxu1 }
 0x243   :  { %v782_v62 = vpop.f32.mrb[10].mxu1 }
 0x244   :  { %v783_v63 = vadd.f32 %v973_v58, %v782_v62  ;;  %v1102_v0 = vpop.f32.mrb[11].mxu1  ;;  %v786_v1 = vmax.f32 %v780_v60, 0.0 }
 0x246   :  { %v787_v2 = vmax.f32 %v783_v63, 0.0 }
 0x248   :  { %v788_v3 = vpack.c.bf16 %v787_v2, %v786_v1 }
 0x24a   :  { %1120 = vmatmul.mubr.bf16.vlgmr.msra.gmra.mrb[8].mxu0 %v788_v3 }
 0x31d   :  { %v894_v4 = vpop.f32.mrb[8].mxu0 }
 0x31e   :  { %v895_v5 = vadd.f32 %v982_v43, %v894_v4  ;;  %v1121_v6 = vpop.f32.mrb[9].mxu0 }
 0x31f   :  { %v897_v7 = vpop.f32.mrb[10].mxu0 }
 0x320   :  { %901 = vst [vmem:[#allocation10] sm:$0xff] %v895_v5  ;;  %v898_v8 = vadd.f32 %v982_v43, %v897_v7  ;;  %v1122_v9 = vpop.f32.mrb[11].mxu0 }
 0x322   :  { %902 = vst [vmem:[#allocation10 + $0x8] sm:$0xff] %v898_v8 }
 0x323   :  { %907 = vsyncadd [#allocation4], 128  ;;  %s1329_s4 = smov [#allocation10]  }
 0x324   :  { %s908_s8 = sshll.u32 %s1329_s4, 4  ;;  %s909_s8 = int_to_ptr.vmem [resolvable:$true] %s908_s8 }
 0x325   :  { %s1289_s9 = scalar_lea.vmem %s909_s8, 128  ;;  %s1293_s10 = scalar_lea.vmem %s909_s8, 256 }
 0x326   :  { %p1290_p4 = scmp.ne.s32.totalorder %s909_s8, %s1289_s9  ;;  %p1294_p5 = scmp.lt.s32.totalorder %s909_s8, %s909_s8 }
 0x327   :  { %p1295_p6 = scmp.lt.s32.totalorder %s1293_s10, %s1289_s9 }
 0x329   :  { %p1296_p7 = por %p1295_p6, %p1294_p5 }
 0x32b   :  { %p1297_p8 = pnand %p1296_p7, %p1290_p4 }
 0x32d   :  { %1300 = shalt.err (!%p1297_p8)
}
 0x32e   :  { %s1301_s14 = scalar_lea.hbm %s1487_s7, 128 }
 0x32f   :  { %p1302_p9 = scmp.ne.s32.totalorder %s1487_s7, %s1301_s14  ;;  %p1305_p10 = scmp.lt.u32.totalorder %s1301_s14, %s1487_s7 }
 0x331   :  { %p1307_p11 = pnand %p1305_p10, %p1302_p9 }
 0x333   :  { %1310 = shalt.err (!%p1307_p11)
}
 0x334   :  { %s1330_s0 = smov 128   ;;  %s1331_s16 = smov 8  }
 0x335   :  { %914 = dma.vmem_to_hbm [thread:$0]  %s909_s8, 128, %s1487_s7, [#allocation4], %s1330_s0, %s1330_s0, %s1331_s16  }
 0x336   :  { %1317 = dma.done.wait [#allocation4], 256  }
 0x337   :  { %1318 = vsyncadd [#allocation4], 4294967040 }
 0x338   :  { %918 = vsyncpa [#allocation3], 1 }
 0x339   :  { %919 = vsyncpa [#allocation6], 1 }
 0x33a   :  { %920 = vsyncpa [#allocation9], 1 }
 0x33b   :  { %921 = vsyncpa [#allocation4], 1 }

</bundles_post_ra>
